<compile_context>
chip_gen: v5e
topology: v5e:2x2
jax: 0.10.0
libtpu: 0.0.40
codegen_flags: <defaults>
</compile_context>

<pallas_src>
import functools

import jax
import jax.numpy as jnp
from jax.experimental import pallas as pl
from jax.experimental.pallas import tpu as pltpu

NEG_INF = -1e30   # finite "masked" value (avoids NaN on all-masked rows)


# ----------------------------------------------------------------------------
# Hardware / sizing helpers
# ----------------------------------------------------------------------------
def _round_up(x, m):
    return ((x + m - 1) // m) * m


@functools.lru_cache(maxsize=None)
def _vmem_capacity_bytes():
    """Physical VMEM of the current chip (64 MiB v7x, 128 MiB v5e/v6e)."""
    try:
        return int(pltpu.get_tpu_info().vmem_capacity_bytes)
    except Exception:
        return 64 * 1024 * 1024   # conservative (v7x) fallback


def _vmem_budget_bytes():
    return (3 * _vmem_capacity_bytes()) // 4     # ~48 MiB v7x, ~96 MiB v5e/v6e


def _vmem_limit_bytes():
    return min((9 * _vmem_capacity_bytes()) // 10, 120 * 1024 * 1024)


def _blk_bytes(shape, itemsize):
    """Physical VMEM footprint of a block: last dim padded to 128 lanes,
    second-to-last to 8 sublanes (a (G,tq,1) f32 stat really costs G*tq*128*4)."""
    lead = 1
    for d in shape[:-2]:
        lead *= d
    sub = _round_up(shape[-2], 8)
    lane = _round_up(shape[-1], 128)
    return lead * sub * lane * itemsize


def _div_tile(dim, cap):
    """Largest multiple-of-128 tile <= cap that divides dim exactly (reduction
    axes must never feed padded garbage into the accumulator)."""
    if dim <= cap:
        return dim
    t = (cap // 128) * 128
    while t >= 128:
        if dim % t == 0:
            return t
        t -= 128
    # TODO(synk): tail-mask the last reduction block instead of this full-axis
    # fallback; embed dims are normally multiples of 128 so it rarely triggers.
    return dim


def _spec(shape, index_map, nbuf=2):
    """BlockSpec with optional deeper pipelining (graceful fallback)."""
    if nbuf > 2:
        try:
            return pl.BlockSpec(shape, index_map, pipeline_mode=pl.Buffered(nbuf))
        except TypeError:        # pipeline_mode unavailable in this JAX version
            pass
    return pl.BlockSpec(shape, index_map)


# ----------------------------------------------------------------------------
# Tiled linear kernel:  y = x @ w + b      x:(M,K)  w:(K,N)  b:(1,N)  y:(M,N)
# ----------------------------------------------------------------------------
def _linear_kernel_acc(x_ref, w_ref, b_ref, o_ref, acc_ref):
    @pl.when(pl.program_id(2) == 0)
    def _():
        acc_ref[...] = jnp.zeros(acc_ref.shape, jnp.float32)

    acc_ref[...] += jnp.dot(x_ref[...], w_ref[...],
                            preferred_element_type=jnp.float32)

    @pl.when(pl.program_id(2) == pl.num_programs(2) - 1)
    def _():
        o_ref[...] = (acc_ref[...] + b_ref[...].astype(jnp.float32)).astype(o_ref.dtype)


def _linear_kernel_single(x_ref, w_ref, b_ref, o_ref):
    # single reduction step: no f32 scratch, straight MXU -> store
    o_ref[...] = (jnp.dot(x_ref[...], w_ref[...],
                          preferred_element_type=jnp.float32)
                  + b_ref[...].astype(jnp.float32)).astype(o_ref.dtype)


def _linear_tiles(M, K, N, itemsize, budget):
    tm = min(M, 512)
    tn = min(N, 1024)
    tk = _div_tile(K, 512)

    def usage(tm_, tn_):
        u = 2 * _blk_bytes((tm_, tk), itemsize)          # x (double buffered)
        u += 2 * _blk_bytes((tk, tn_), itemsize)         # w
        u += 2 * _blk_bytes((1, tn_), 4)                 # bias
        u += 2 * _blk_bytes((tm_, tn_), itemsize)        # out
        if tk < K:
            u += _blk_bytes((tm_, tn_), 4)               # f32 accumulator
        return u

    while usage(tm, tn) > budget and tn > 256:
        tn = max(128, ((tn // 2) // 128) * 128)
    while usage(tm, tn) > budget and tm > 256:
        tm = max(128, ((tm // 2) // 8) * 8)
    return tm, tn, tk


def linear_pallas(x, w, b):
    # x: (M, K), w: (K, N) [already transposed], b: (N,) f32
    M, K = x.shape
    K2, N = w.shape
    assert K == K2
    itemsize = jnp.dtype(x.dtype).itemsize
    tm, tn, tk = _linear_tiles(M, K, N, itemsize, _vmem_budget_bytes())
    b2 = b.reshape(1, N).astype(jnp.float32)
    vmem_limit = _vmem_limit_bytes()

    if tk == K:     # common case for E <= 512: single K step, 2D grid
        return pl.pallas_call(
            _linear_kernel_single,
            out_shape=jax.ShapeDtypeStruct((M, N), x.dtype),
            grid_spec=pltpu.PrefetchScalarGridSpec(
                num_scalar_prefetch=0,
                grid=(pl.cdiv(M, tm), pl.cdiv(N, tn)),
                in_specs=[
                    pl.BlockSpec((tm, K), lambda i, j: (i, 0)),
                    pl.BlockSpec((K, tn), lambda i, j: (0, j)),
                    pl.BlockSpec((1, tn), lambda i, j: (0, j)),
                ],
                out_specs=pl.BlockSpec((tm, tn), lambda i, j: (i, j)),
            ),
            compiler_params=pltpu.CompilerParams(
                dimension_semantics=("parallel", "parallel"),
                vmem_limit_bytes=vmem_limit,
            ),
        )(x, w, b2)

    return pl.pallas_call(
        _linear_kernel_acc,
        out_shape=jax.ShapeDtypeStruct((M, N), x.dtype),
        grid_spec=pltpu.PrefetchScalarGridSpec(
            num_scalar_prefetch=0,
            grid=(pl.cdiv(M, tm), pl.cdiv(N, tn), K // tk),
            in_specs=[
                pl.BlockSpec((tm, tk), lambda i, j, kk: (i, kk)),
                pl.BlockSpec((tk, tn), lambda i, j, kk: (kk, j)),
                pl.BlockSpec((1, tn), lambda i, j, kk: (0, j)),
            ],
            out_specs=pl.BlockSpec((tm, tn), lambda i, j, kk: (i, j)),
            scratch_shapes=[pltpu.VMEM((tm, tn), jnp.float32)],
        ),
        compiler_params=pltpu.CompilerParams(
            dimension_semantics=("parallel", "parallel", "arbitrary"),
            vmem_limit_bytes=vmem_limit,
        ),
    )(x, w, b2)


# ----------------------------------------------------------------------------
# Flash-style attention kernel.
#   One grid step = G heads (same batch element) x one q block x one KV block.
#   Online softmax keeps VMEM at O(G*tq*tk + G*(tq+tk)*Dh) regardless of T, S.
# ----------------------------------------------------------------------------
def _attn_kernel(*refs, has_mask, has_bias):
    idx = 0
    mask_ref = bias_ref = None
    if has_mask:
        mask_ref = refs[idx]; idx += 1
    if has_bias:
        bias_ref = refs[idx]; idx += 1
    q_ref, k_ref, v_ref, o_ref, m_sc, l_sc, acc_sc = refs[idx:]

    kj = pl.program_id(2)

    @pl.when(kj == 0)
    def _():
        m_sc[...] = jnp.full(m_sc.shape, -jnp.inf, jnp.float32)
        l_sc[...] = jnp.zeros(l_sc.shape, jnp.float32)
        acc_sc[...] = jnp.zeros(acc_sc.shape, jnp.float32)

    # (G,tq,Dh) . (G,tk,Dh) -> (G,tq,tk); contract last dims, batch over heads —
    # no explicit k transpose, bf16 inputs hit the bf16 MXU rate, f32 result.
    # q is already pre-scaled (scaling folded into the in_proj weights).
    s = jax.lax.dot_general(
        q_ref[...], k_ref[...],
        dimension_numbers=(((2,), (2,)), ((0,), (0,))),
        preferred_element_type=jnp.float32)
    if has_mask:
        s = s + mask_ref[...]                           # (1,1,tk) additive, f32
    if has_bias:
        s = s + bias_ref[...].astype(jnp.float32)       # (G,tq,tk)

    m_prev = m_sc[...]
    m_new = jnp.maximum(m_prev, jnp.max(s, axis=-1, keepdims=True))
    alpha = jnp.exp(m_prev - m_new)
    p = jnp.exp(s - m_new)                              # softmax stays in f32
    l_sc[...] = alpha * l_sc[...] + jnp.sum(p, axis=-1, keepdims=True)

    pv = jax.lax.dot_general(
        p.astype(v_ref.dtype), v_ref[...],              # MXU in input dtype
        dimension_numbers=(((2,), (1,)), ((0,), (0,))),
        preferred_element_type=jnp.float32)
    acc_sc[...] = alpha * acc_sc[...] + pv
    m_sc[...] = m_new

    @pl.when(kj == pl.num_programs(2) - 1)
    def _():
        inv = pl.reciprocal(l_sc[...], approx=True)     # EUP slot (free-ish)
        o_ref[...] = (acc_sc[...] * inv).astype(o_ref.dtype)


def _attn_config(BH, num_heads, T, S, Dh, itemsize, has_bias, budget,
                 q_block=None, kv_block=None):
    """Pick (heads/step G, q tile, kv tile, padded S, kv buffer depth) that fit
    the generation-aware VMEM budget (lane padding included)."""
    q_caps = [c for c in (512, 256, 128, 64, 32, 16, 8)
              if q_block is None or c <= q_block] or [8]
    kv_caps = [c for c in (512, 256, 128)
               if kv_block is None or c <= kv_block] or [128]
    divisors = [g for g in range(num_heads, 0, -1) if num_heads % g == 0]

    def kv_tile(cap):
        if S <= cap:
            return S, S                     # single KV block, no padding
        s_pad = _round_up(S, 128)
        t = (cap // 128) * 128
        while t > 128 and s_pad % t:
            t -= 128
        return t, s_pad

    def usage(g, tq, tk, nbuf):
        total = 2 * _blk_bytes((g, tq, Dh), itemsize)             # q
        total += nbuf * 2 * _blk_bytes((g, tk, Dh), itemsize)     # k + v
        if has_bias:
            total += nbuf * _blk_bytes((g, tq, tk), itemsize)     # bias
        total += 2 * _blk_bytes((1, 1, tk), 4)                    # additive mask
        total += 2 * _blk_bytes((g, tq, Dh), itemsize)            # out
        total += 2 * _blk_bytes((g, tq, 1), 4)                    # m, l stats
        total += _blk_bytes((g, tq, Dh), 4)                       # f32 acc
        return total

    for need_parallel in (True, False):
        for qc in q_caps:
            tq = min(T, qc)
            nq = pl.cdiv(T, tq)
            for g in divisors:
                if need_parallel and (BH // g) * nq < 2:
                    continue                # keep >= 2 parallel steps (megacore)
                for kc in kv_caps:
                    tk, s_pad = kv_tile(kc)
                    if usage(g, tq, tk, 2) <= budget:
                        nbuf = 3 if (s_pad // tk >= 3
                                     and usage(g, tq, tk, 3) <= budget) else 2
                        return g, tq, tk, s_pad, nbuf
    tk, s_pad = kv_tile(128)
    return 1, min(T, 8), tk, s_pad, 2


def attention_pallas(q, k, v, add_mask, attn_bias, *, num_heads,
                     q_block=None, kv_block=None):
    # q,k,v: (B*H, T/S, Dh); add_mask: (B,1,S) f32 additive or None;
    # attn_bias: (B*H, T, S) or None. Returns (B*H, T, Dh) in q.dtype.
    BH, T, Dh = q.shape
    S = k.shape[1]
    bsz = BH // num_heads
    itemsize = jnp.dtype(q.dtype).itemsize
    has_bias = attn_bias is not None

    G, tq, tk, S_pad, nbuf = _attn_config(
        BH, num_heads, T, S, Dh, itemsize, has_bias, _vmem_budget_bytes(),
        q_block=q_block, kv_block=kv_block)

    # Ragged / non-128-multiple source length: pad K/V/bias up to the KV tile
    # and neutralize the pad columns through the additive mask (keeps VMEM
    # bounded instead of making the whole axis resident).
    if S_pad != S:
        pad = S_pad - S
        k = jnp.pad(k, ((0, 0), (0, pad), (0, 0)))
        v = jnp.pad(v, ((0, 0), (0, pad), (0, 0)))
        if attn_bias is not None:
            attn_bias = jnp.pad(attn_bias, ((0, 0), (0, 0), (0, pad)))
        if add_mask is None:
            add_mask = jnp.zeros((bsz, 1, S), jnp.float32)
        add_mask = jnp.pad(add_mask, ((0, 0), (0, 0), (0, pad)),
                           constant_values=NEG_INF)
    has_mask = add_mask is not None

    nq = pl.cdiv(T, tq)      # partial q blocks are fine (parallel axis)
    nk = S_pad // tk         # reduction axis always divides exactly

    in_specs, args = [], []
    if has_mask:
        in_specs.append(pl.BlockSpec(
            (1, 1, tk), lambda i, qi, kj: ((i * G) // num_heads, 0, kj)))
        args.append(add_mask.astype(jnp.float32))
    if has_bias:
        in_specs.append(_spec((G, tq, tk), lambda i, qi, kj: (i, qi, kj), nbuf))
        args.append(attn_bias.astype(q.dtype))      # stream bias in compute dtype
    in_specs += [
        pl.BlockSpec((G, tq, Dh), lambda i, qi, kj: (i, qi, 0)),
        _spec((G, tk, Dh), lambda i, qi, kj: (i, kj, 0), nbuf),
        _spec((G, tk, Dh), lambda i, qi, kj: (i, kj, 0), nbuf),
    ]
    args += [q, k, v]

    kernel = functools.partial(_attn_kernel, has_mask=has_mask, has_bias=has_bias)
    return pl.pallas_call(
        kernel,
        out_shape=jax.ShapeDtypeStruct((BH, T, Dh), q.dtype),
        grid_spec=pltpu.PrefetchScalarGridSpec(
            num_scalar_prefetch=0,
            grid=(BH // G, nq, nk),
            in_specs=in_specs,
            out_specs=pl.BlockSpec((G, tq, Dh), lambda i, qi, kj: (i, qi, 0)),
            scratch_shapes=[
                pltpu.VMEM((G, tq, 1), jnp.float32),    # running max
                pltpu.VMEM((G, tq, 1), jnp.float32),    # running denom
                pltpu.VMEM((G, tq, Dh), jnp.float32),   # running numerator
            ],
        ),
        compiler_params=pltpu.CompilerParams(
            dimension_semantics=("parallel", "parallel", "arbitrary"),
            vmem_limit_bytes=_vmem_limit_bytes(),
        ),
    )(*args)


# ----------------------------------------------------------------------------
# One-time parameter preparation (outside the per-call path):
#   - transpose weights to (K, N),
#   - fold q-scaling into the q slice of in_proj,
#   - cast weights to the compute dtype (bf16 default: halves weight/activation
#     DMA and hits the MXU's bf16 rate; pass jnp.float32 for tight numerics).
# ----------------------------------------------------------------------------
def prepare_params(params, embed_dim, num_heads, scaling_factor=1,
                   dtype=jnp.bfloat16):
    head_dim = embed_dim // num_heads
    scaling = (head_dim * scaling_factor) ** (-0.5)

    in_w = jnp.asarray(params["in_proj_w"]).T.astype(jnp.float32)    # (E, 3E)
    in_b = jnp.asarray(params["in_proj_b"]).astype(jnp.float32)      # (3E,)
    scale_vec = jnp.concatenate([
        jnp.full((embed_dim,), scaling, jnp.float32),
        jnp.ones((2 * embed_dim,), jnp.float32)])
    in_w = in_w * scale_vec[None, :]
    in_b = in_b * scale_vec

    out_w = jnp.asarray(params["out_proj_w"]).T.astype(jnp.float32)  # (E, E)
    out_b = jnp.asarray(params["out_proj_b"]).astype(jnp.float32)

    if dtype is not None:
        in_w = in_w.astype(dtype)
        out_w = out_w.astype(dtype)
    return {"in_w": in_w, "in_b": in_b, "out_w": out_w, "out_b": out_b}


# ----------------------------------------------------------------------------
# Full SelfMultiheadAttention forward (eval mode).
# ----------------------------------------------------------------------------
def self_multihead_attention(query, prepared, num_heads,
                             key_padding_mask=None, attn_bias=None,
                             q_block=None, kv_block=None):
    bsz, tgt_len, embed_dim = query.shape
    head_dim = embed_dim // num_heads
    x = query.astype(prepared["in_w"].dtype)

    # ---- in_proj: (B*T, E) @ (E, 3E) + b  (q-scaling already folded in) ----
    qkv = linear_pallas(x.reshape(bsz * tgt_len, embed_dim),
                        prepared["in_w"], prepared["in_b"])           # (B*T, 3E)
    q, k, v = jnp.split(qkv, 3, axis=-1)

    def to_heads(t):
        return (t.reshape(bsz, tgt_len, num_heads, head_dim)
                 .transpose(0, 2, 1, 3)
                 .reshape(bsz * num_heads, tgt_len, head_dim))

    q, k, v = to_heads(q), to_heads(k), to_heads(v)

    # ---- tiny (B,1,S) additive mask instead of a (B*H,T,S) bias tensor ----
    add_mask = None
    if key_padding_mask is not None:
        add_mask = jnp.where(key_padding_mask.astype(bool),
                             jnp.float32(NEG_INF), jnp.float32(0.0))[:, None, :]

    # ---- fused flash-style attention ----
    o = attention_pallas(q, k, v, add_mask, attn_bias, num_heads=num_heads,
                         q_block=q_block, kv_block=kv_block)

    # ---- merge heads + out_proj ----
    o = (o.reshape(bsz, num_heads, tgt_len, head_dim)
          .transpose(0, 2, 1, 3)
          .reshape(bsz * tgt_len, embed_dim))
    out = linear_pallas(o, prepared["out_w"], prepared["out_b"])
    return out.reshape(bsz, tgt_len, embed_dim).astype(query.dtype)


# ----------------------------------------------------------------------------
# Pure-JAX reference (matches the PyTorch module, eval mode).
# ----------------------------------------------------------------------------
def reference(query, params, num_heads, key_padding_mask, attn_bias,
              scaling_factor=1):
    bsz, tgt_len, embed_dim = query.shape
    head_dim = embed_dim // num_heads
    scaling = (head_dim * scaling_factor) ** (-0.5)
    qkv = query @ params["in_proj_w"].T + params["in_proj_b"]
    q, k, v = jnp.split(qkv, 3, axis=-1)

    def to_heads(t):
        return (t.reshape(bsz, tgt_len, num_heads, head_dim)
                 .transpose(0, 2, 1, 3)
                 .reshape(bsz * num_heads, tgt_len, head_dim))

    q = to_heads(q) * scaling
    k = to_heads(k)
    v = to_heads(v)
    w = jnp.einsum("btd,bsd->bts", q, k)
    if key_padding_mask is not None:
        w = w.reshape(bsz, num_heads, tgt_len, -1)
        w = jnp.where(key_padding_mask[:, None, None, :].astype(bool), -jnp.inf, w)
        w = w.reshape(bsz * num_heads, tgt_len, -1)
    if attn_bias is not None:
        w = w + attn_bias
    a = jax.nn.softmax(w, axis=-1)
    o = jnp.einsum("bts,bsd->btd", a, v)
    o = (o.reshape(bsz, num_heads, tgt_len, head_dim)
          .transpose(0, 2, 1, 3)
          .reshape(bsz, tgt_len, embed_dim))
    return o @ params["out_proj_w"].T + params["out_proj_b"]


def _make_params(key, embed_dim):
    ks = jax.random.split(key, 4)
    return {
        "in_proj_w": 0.1 * jax.random.normal(ks[0], (3 * embed_dim, embed_dim), jnp.float32),
        "in_proj_b": 0.1 * jax.random.normal(ks[1], (3 * embed_dim,), jnp.float32),
        "out_proj_w": 0.1 * jax.random.normal(ks[2], (embed_dim, embed_dim), jnp.float32),
        "out_proj_b": 0.1 * jax.random.normal(ks[3], (embed_dim,), jnp.float32),
    }


if __name__ == "__main__":
    # ---------------------- tiny shapes (module-scale) ----------------------
    bsz, tgt_len, embed_dim, num_heads = 2, 8, 32, 4
    key = jax.random.PRNGKey(0)
    kp, kq, kb = jax.random.split(key, 3)
    params = _make_params(kp, embed_dim)
    query = jax.random.normal(kq, (bsz, tgt_len, embed_dim), jnp.float32)
    key_padding_mask = jnp.zeros((bsz, tgt_len), dtype=jnp.bool_).at[1, -2:].set(True)
    attn_bias = 0.05 * jax.random.normal(
        kb, (bsz * num_heads, tgt_len, tgt_len), jnp.float32)

    # f32 path (tight tolerance)
    prep_f32 = prepare_params(params, embed_dim, num_heads, dtype=jnp.float32)
    out = jax.block_until_ready(self_multihead_attention(
        query, prep_f32, num_heads, key_padding_mask, attn_bias))
    ref = reference(query, params, num_heads, key_padding_mask, attn_bias)
    assert out.shape == (bsz, tgt_len, embed_dim)
    assert jnp.allclose(out, ref, atol=5e-3, rtol=5e-3), \
        f"f32 mismatch, max err {float(jnp.max(jnp.abs(out - ref)))}"

    # no-mask / no-bias path
    out_nb = jax.block_until_ready(
        self_multihead_attention(query, prep_f32, num_heads))
    ref_nb = reference(query, params, num_heads, None, None)
    assert jnp.allclose(out_nb, ref_nb, atol=5e-3, rtol=5e-3), "no-mask mismatch"

    # default bf16 compute path (f32 accumulation, looser tolerance)
    prep_bf16 = prepare_params(params, embed_dim, num_heads)
    out_bf = jax.block_until_ready(self_multihead_attention(
        query, prep_bf16, num_heads, key_padding_mask, attn_bias))
    assert jnp.allclose(out_bf.astype(jnp.float32), ref, atol=5e-2, rtol=5e-2), \
        "bf16 mismatch"

    # ---- medium shapes: exercises q-tiling, multi-block KV streaming with
    # triple buffering, S padding to the KV tile, and partial q blocks ----
    bsz2, seq2 = 2, 288
    key2 = jax.random.PRNGKey(1)
    kp2, kq2, kb2 = jax.random.split(key2, 3)
    params2 = _make_params(kp2, embed_dim)
    query2 = jax.random.normal(kq2, (bsz2, seq2, embed_dim), jnp.float32)
    kpm2 = (jnp.zeros((bsz2, seq2), dtype=jnp.bool_)
            .at[0, -7:].set(True).at[1, 100:110].set(True))
    bias2 = 0.05 * jax.random.normal(
        kb2, (bsz2 * num_heads, seq2, seq2), jnp.float32)

    prep2_f32 = prepare_params(params2, embed_dim, num_heads, dtype=jnp.float32)
    out2 = jax.block_until_ready(self_multihead_attention(
        query2, prep2_f32, num_heads, kpm2, bias2, q_block=64, kv_block=128))
    ref2 = reference(query2, params2, num_heads, kpm2, bias2)
    assert jnp.allclose(out2, ref2, atol=5e-3, rtol=5e-3), \
        f"medium f32 mismatch, max err {float(jnp.max(jnp.abs(out2 - ref2)))}"

    prep2_bf16 = prepare_params(params2, embed_dim, num_heads)
    out2_bf = jax.block_until_ready(self_multihead_attention(
        query2, prep2_bf16, num_heads, kpm2, bias2, q_block=64, kv_block=128))
    assert jnp.allclose(out2_bf.astype(jnp.float32), ref2, atol=1e-1, rtol=1e-1), \
        "medium bf16 mismatch"

    print("KERNEL_OK")
</pallas_src>

<mosaic_0001>
module attributes {stable_mosaic.version = 11 : i64} {
  func.func @_linear_kernel_single(%arg0: i32, %arg1: i32, %arg2: memref<16x32xf32, #tpu.memory_space<vmem>>, %arg3: memref<32x96xf32, #tpu.memory_space<vmem>>, %arg4: memref<1x96xf32, #tpu.memory_space<vmem>>, %arg5: memref<16x96xf32, #tpu.memory_space<vmem>>) attributes {dimension_semantics = [#tpu.dimension_semantics<parallel>, #tpu.dimension_semantics<parallel>], iteration_bounds = array<i64: 1, 1>, scalar_prefetch = 0 : i64, scratch_operands = 0 : i64, tpu.core_type = #tpu.core_type<tc>, window_params = [{transform_indices = @transform_0, window_bounds = array<i64: 16, 32>}, {transform_indices = @transform_1, window_bounds = array<i64: 32, 96>}, {transform_indices = @transform_2, window_bounds = array<i64: 1, 96>}, {transform_indices = @transform_3, window_bounds = array<i64: 16, 96>}]} {
    %c0 = arith.constant 0 : index
    %c0_0 = arith.constant 0 : index
    %0 = vector.load %arg2[%c0, %c0_0] : memref<16x32xf32, #tpu.memory_space<vmem>>, vector<16x32xf32>
    %c0_1 = arith.constant 0 : index
    %c0_2 = arith.constant 0 : index
    %1 = vector.load %arg3[%c0_1, %c0_2] : memref<32x96xf32, #tpu.memory_space<vmem>>, vector<32x96xf32>
    %cst = arith.constant dense<0.000000e+00> : vector<16x96xf32>
    %2 = tpu.matmul %0, %1, %cst {dimension_numbers = #tpu.dot_dimension_numbers<[1], [0], [0], [1], [0, 0, 1, 1], [], []>} : vector<16x32xf32>, vector<32x96xf32>, vector<16x96xf32> -> vector<16x96xf32>
    %c0_3 = arith.constant 0 : index
    %c0_4 = arith.constant 0 : index
    %3 = vector.load %arg4[%c0_3, %c0_4] : memref<1x96xf32, #tpu.memory_space<vmem>>, vector<1x96xf32>
    %4 = vector.broadcast %3 : vector<1x96xf32> to vector<16x96xf32>
    %5 = arith.addf %2, %4 : vector<16x96xf32>
    %c0_5 = arith.constant 0 : index
    %c0_6 = arith.constant 0 : index
    %6 = vector.load %arg5[%c0_5, %c0_6] : memref<16x96xf32, #tpu.memory_space<vmem>>, vector<16x96xf32>
    tpu.vector_store %arg5[%c0_5, %c0_6], %5 {strides = array<i32>} : memref<16x96xf32, #tpu.memory_space<vmem>>, vector<16x96xf32>,
    return
  }
  func.func @transform_0(%arg0: i32, %arg1: i32) -> (i32, i32) {
    %c0_i32 = arith.constant 0 : i32
    %c0_i32_0 = arith.constant 0 : i32
    return %arg0, %c0_i32 : i32, i32
  }
  func.func @transform_1(%arg0: i32, %arg1: i32) -> (i32, i32) {
    %c0_i32 = arith.constant 0 : i32
    %c0_i32_0 = arith.constant 0 : i32
    return %c0_i32, %arg1 : i32, i32
  }
  func.func @transform_2(%arg0: i32, %arg1: i32) -> (i32, i32) {
    %c0_i32 = arith.constant 0 : i32
    %c0_i32_0 = arith.constant 0 : i32
    return %c0_i32, %arg1 : i32, i32
  }
  func.func @transform_3(%arg0: i32, %arg1: i32) -> (i32, i32) {
    %c0_i32 = arith.constant 0 : i32
    return %arg0, %arg1 : i32, i32
  }
}

</mosaic_0001>

<bundles_post_ra>
// kernel: tpu_custom_call.1
= control target key start
LH: loop header
LB: loop body
LE: loop exit
PB: predicated region body
PF: predicated region fallthrough
CT: control target
= control target key end

     0   :  { %8 = vsyncpa [#allocation3], 0  ;;  %s246_s0 = inlined_call_operand.hbm [shape: f32[16,32], index: 0, kind: input, shape index: {}]   ;;  %s247_s1 = inlined_call_operand.hbm [shape: f32[32,96], index: 1, kind: input, shape index: {}]   ;;  %s248_s2 = inlined_call_operand.vmem [shape: f32[1,96], index: 2, kind: input, shape index: {}]   ;;  %s249_s3 = inlined_call_operand.hbm [shape: f32[16,96], index: 3, kind: output, shape index: {}]  }
   0x1   :  { %9 = vsyncpa [#allocation6], 0 }
   0x2   :  { %10 = vsyncpa [#allocation4], 0  ;;  %s15_s14 = sshll.u32 %s246_s0, 4  ;;  %s200_s15 = smov [#allocation2]   ;;  %s16_s14 = int_to_ptr.hbm [resolvable:$true] %s15_s14 }
   0x3   :  { %s17_s16 = sshll.u32 %s200_s15, 4  ;;  %s28_s19 = sshll.u32 %s247_s1, 4  ;;  %s18_s16 = int_to_ptr.vmem [resolvable:$true] %s17_s16  ;;  %s29_s19 = int_to_ptr.hbm [resolvable:$true] %s28_s19 }
   0x4   :  { %s201_s20 = smov 128   ;;  %s202_s21 = smov 8  }
   0x5   :  { %23 = dma.hbm_to_vmem [thread:$0]  %s16_s14, 256, %s18_s16, [#allocation3], %s201_s20, %s201_s20, %s202_s21  }
   0x6   :  { %s203_s22 = smov [#allocation5]  }
   0x7   :  { %s30_s23 = sshll.u32 %s203_s22, 4  ;;  %s31_s23 = int_to_ptr.vmem [resolvable:$true] %s30_s23 }
   0x8   :  { %36 = dma.hbm_to_vmem [thread:$0]  %s29_s19, 512, %s31_s23, [#allocation6], %s201_s20, %s201_s20, %s202_s21  }
   0x9   :  { %194 = dma.done.wait [#allocation3], 256  }
   0xa   :  { %195 = vsyncadd [#allocation3], 4294967040 }
   0xb   :  { %196 = dma.done.wait [#allocation6], 512  }
   0xc   :  { %197 = vsyncadd [#allocation6], 4294966784  ;;  %v52_v0 = vld [vmem:[#allocation5 + $0x18] sm:$0xff]  ;;  %v51_v1 = vld [vmem:[#allocation5 + $0x10] sm:$0xff]  ;;  %vm57_vm0 = vcmask 261120   ;;  %s204_s24 = smov [#allocation7]  }
   0xd   :  { %76 = vmatpush.msra.mxu0 %v52_v0  ;;  %112 = vmatpush.msra.mxu1 %v52_v0  ;;  %v50_v2 = vld [vmem:[#allocation5 + $0x8] sm:$0xff]  ;;  %v49_v3 = vld [vmem:[#allocation5] sm:$0xff]  ;;  %v47_v4 = vld [vmem:[#allocation2] sm:$0xff]  ;;  %s94_s25 = sshll.u32 %s204_s24, 4  ;;  %s96_s28 = sshll.u32 %s249_s3, 4  ;;  %vm87_vm1 = vcmask 785408   ;;  %s95_s25 = int_to_ptr.vmem [resolvable:$true] %s94_s25  ;;  %s97_s28 = int_to_ptr.hbm [resolvable:$true] %s96_s28 }
   0xe   :  { %v48_v5 = vld [vmem:[#allocation2 + $0x8] sm:$0xff]  ;;  %v121_v6 = vld [vmem:[%s248_s2] ss:$0 sm:$0xff] }
   0xf   :  { %77 = vmatpush.msra.mxu0 %v51_v1  ;;  %113 = vmatpush.msra.mxu1 %v51_v1 }
  0x11   :  { %78 = vmatpush.msra.mxu0 %v50_v2  ;;  %114 = vmatpush.msra.mxu1 %v50_v2 }
  0x13   :  { %79 = vmatpush.msra.mxu0 %v49_v3  ;;  %115 = vmatpush.msra.mxu1 %v49_v3 }
  0x14   :  { %110 = vmatmul.msk.f32.vlgmr.msra.gmra.mxu0 %vm57_vm0, %v47_v4  ;;  %111 = vmatmul.msk.f32.vlgmr.msra.gmra.mxu1 %vm57_vm0, %v48_v5 }
  0x91   :  { %v81_v7 = vpop.f32.mrf.mxu0  ;;  %v84_v8 = vpop.f32.mrf.mxu1 }
  0x92   :  { %v82_v9 = vadd.f32 %v121_v6, %v81_v7  ;;  %v85_v10 = vadd.f32 %v121_v6, %v84_v8 }
  0x94   :  { %88 = vst.msk [vmem:[#allocation7] sm:$0xff] %vm87_vm1, %v82_v9 }
  0x95   :  { %89 = vst.msk [vmem:[#allocation7 + $0x8] sm:$0xff] %vm87_vm1, %v85_v10 }
  0x96   :  { %102 = dma.vmem_to_hbm [thread:$0]  %s95_s25, 256, %s97_s28, [#allocation4], %s201_s20, %s201_s20, %s202_s21  }
  0x97   :  { %198 = dma.done.wait [#allocation4], 256  }
  0x98   :  { %199 = vsyncadd [#allocation4], 4294967040 }
  0x99   :  { %107 = vsyncpa [#allocation3], 1 }
  0x9a   :  { %108 = vsyncpa [#allocation6], 1 }
  0x9b   :  { %109 = vsyncpa [#allocation4], 1 }

</bundles_post_ra>
